<compile_context>
chip_gen: v6e
topology: v6e:2x2x1
jax: 0.10.0
libtpu: 0.0.40
codegen_flags: <defaults>
</compile_context>

<pallas_src>
import jax
import jax.numpy as jnp
from jax.experimental import pallas as pl
from jax.experimental.pallas import tpu as pltpu


def _copy_kernel(x_hbm_ref, o_hbm_ref):
    # Single HBM->HBM DMA; no VMEM staging, no vector load/store.
    def body(sem):
        cp = pltpu.make_async_copy(x_hbm_ref, o_hbm_ref, sem)
        cp.start()
        cp.wait()

    pl.run_scoped(body, pltpu.SemaphoreType.DMA(()))


def view_expand_ones_middle(a: jax.Array) -> jax.Array:
    """Equivalent of `a.view(3, 1, 1, 1, 1, 2)` for a contiguous [3, 1, 2] input."""
    assert a.shape == (3, 1, 2), f"expected shape (3, 1, 2), got {a.shape}"
    assert a.size == 3 * 1 * 1 * 1 * 1 * 2

    # Metadata-only flatten (row-major, matching torch contiguous layout).
    flat = a.reshape(3, 2)

    out_flat = pl.pallas_call(
        _copy_kernel,
        out_shape=jax.ShapeDtypeStruct((3, 2), a.dtype),
        in_specs=[pl.BlockSpec(memory_space=pl.ANY)],
        out_specs=pl.BlockSpec(memory_space=pl.ANY),
        cost_estimate=pl.CostEstimate(
            flops=0, transcendentals=0, bytes_accessed=48
        ),
    )(flat)

    # Metadata-only reinterpretation to the target view shape.
    return out_flat.reshape(3, 1, 1, 1, 1, 2)


if __name__ == "__main__":
    key = jax.random.PRNGKey(0)
    a = jax.random.normal(key, (3, 1, 2), dtype=jnp.float32)

    out = view_expand_ones_middle(a)
    out = jax.block_until_ready(out)

    # Correctness check against the plain-JAX reference of torch's .view
    ref = a.reshape(3, 1, 1, 1, 1, 2)
    assert out.shape == (3, 1, 1, 1, 1, 2), out.shape
    assert out.dtype == jnp.float32, out.dtype
    assert bool(jnp.array_equal(out, ref)), "mismatch vs reference reshape"

    print("KERNEL_OK")
</pallas_src>

<mosaic_0001>
module attributes {stable_mosaic.version = 11 : i64} {
  func.func @_copy_kernel(%arg0: memref<3x2xf32, #tpu.memory_space<any>>, %arg1: memref<3x2xf32, #tpu.memory_space<any>>) attributes {dimension_semantics = [], scalar_prefetch = 0 : i64, scratch_operands = 0 : i64, tpu.core_type = #tpu.core_type<tc>} {
    "tpu.region"() ({
      %0 = tpu.sem_alloc : memref<!tpu.dma_semaphore, #tpu.memory_space<semaphore_mem>>
      tpu.enqueue_dma source(%arg0 : memref<3x2xf32, #tpu.memory_space<any>>) target(%arg1 : memref<3x2xf32, #tpu.memory_space<any>>) target_semaphore(%0 : memref<!tpu.dma_semaphore, #tpu.memory_space<semaphore_mem>>)
      tpu.wait_dma2 semaphore(%0 : memref<!tpu.dma_semaphore, #tpu.memory_space<semaphore_mem>>) src(%arg0 : memref<3x2xf32, #tpu.memory_space<any>>) dst(%arg1 : memref<3x2xf32, #tpu.memory_space<any>>)
      tpu.yield
    }) : () -> ()
    return
  }
}

</mosaic_0001>

<bundles_post_ra>
// kernel: tpu_custom_call.1
= control target key start
LH: loop header
LB: loop body
LE: loop exit
PB: predicated region body
PF: predicated region fallthrough
CT: control target
= control target key end

     0   :  { %s83_s0 = inlined_call_operand.vmem [shape: f32[3,2], index: 0, kind: input, shape index: {}]   ;;  %s84_s1 = inlined_call_operand.vmem [shape: f32[3,2], index: 1, kind: output, shape index: {}]  }
   0x1   :  { %v24_v0 = vld [vmem:[%s83_s0] sm:$0x7] }
   0x2   :  { %25 = vst [vmem:[%s84_s1] sm:$0x7] %v24_v0 }
   0x3   :  { %51 = vsyncadd [#allocation2], 48 }
   0x4   :  { %65 = dma.done.wait [#allocation2], 48 }
   0x5   :  { %66 = vsyncadd [#allocation2], 4294967248 }

</bundles_post_ra>
